<compile_context>
chip_gen: v7x
topology: tpu7x:2x2x1
jax: 0.10.0
libtpu: 0.0.40
codegen_flags: <defaults>
</compile_context>

<pallas_src>
import jax
import jax.numpy as jnp
import numpy as np
from jax.experimental import pallas as pl
from jax.experimental.pallas import tpu as pltpu


def _round_up(n, m):
    return ((n + m - 1) // m) * m


def _cdiv(a, b):
    return (a + b - 1) // b


def _semilinear_kernel(params_ref, x_ref, o_ref):
    """One row-block of the lane-dense slab.

    params_ref : SMEM f32[3] = [w00/tau, b0/tau, b1/tau]
    x_ref      : VMEM f32[TR, C]      (x packed 128-lane dense)
    o_ref      : VMEM f32[2, TR, C]   (plane 0 = p0, plane 1 = p1)
    """
    w0 = params_ref[0]
    b0 = params_ref[1]
    b1 = params_ref[2]

    # x * (w/tau) with w == 0: kept (not folded away) so NaN/Inf in x propagate
    # exactly like the PyTorch module.  Pure VPU broadcast multiply.
    t = x_ref[...] * w0
    l0 = t + b0
    l1 = t + b1

    # Two-plane numerically-stable softmax: fully elementwise, no XLU reduce.
    m = jnp.maximum(l0, l1)
    e0 = jnp.exp(l0 - m)
    e1 = jnp.exp(l1 - m)
    inv = 1.0 / (e0 + e1)
    o_ref[0] = (e0 * inv).astype(o_ref.dtype)
    o_ref[1] = (e1 * inv).astype(o_ref.dtype)


def semilinear_temperatured(x, betas, tau, output_features, *,
                            lane_cols=512, block_rows=512,
                            assume_finite_x=False):
    """Pallas implementation of SemiLinearTemperatured.forward (x is (N, 1) f32)."""
    x = x.astype(jnp.float32)
    betas = jnp.asarray(betas, jnp.float32)
    N, F = x.shape
    O = output_features
    assert F == 1, "torch.mm(x, w) requires input_features == 1"
    assert O == 2, "broadcast (N, O-1) + (O,) only valid for output_features == 2"

    # ---- parameter preprocessing (tiny O-element glue stays in plain JAX) ----
    # TODO(synk): sort+cumsum of the 1-element betas vector kept outside the kernel.
    inv_tau = 1.0 / jnp.asarray(tau, jnp.float32)          # works for traced tau too
    b = jnp.cumsum(
        jnp.concatenate([jnp.zeros((1,), jnp.float32), -jnp.sort(betas)])
    )                                                       # (O,)
    b_scaled = b * inv_tau                                  # fold 1/tau
    w0_scaled = jnp.zeros((), jnp.float32) * inv_tau        # w[0,0] == 0 for O == 2

    if assume_finite_x:
        # Review opt #1: for O==2 the logits never depend on x -> constant row.
        # (Changes NaN/Inf propagation from x, hence opt-in.)
        p = jax.nn.softmax(b_scaled)
        return jnp.broadcast_to(p[None, :], (N, O))

    # ---- repack x into a lane-dense slab (rows, C), C multiple of 128 ----
    C = lane_cols
    assert C % 128 == 0
    R_needed = max(1, _cdiv(N, C))
    TR = max(8, _round_up(min(block_rows, R_needed), 8))    # rows per block (mult of 8)
    R_pad = _round_up(R_needed, TR)
    n_slab = R_pad * C

    x_flat = x.reshape(N)
    if n_slab != N:
        x_flat = jnp.pad(x_flat, (0, n_slab - N))           # pad only when needed
    x2d = x_flat.reshape(R_pad, C)

    params = jnp.concatenate([w0_scaled.reshape(1), b_scaled])   # SMEM f32[3]

    grid = (R_pad // TR,)
    out_planes = pl.pallas_call(
        _semilinear_kernel,
        out_shape=jax.ShapeDtypeStruct((O, R_pad, C), jnp.float32),
        grid=grid,
        in_specs=[
            pl.BlockSpec(memory_space=pltpu.MemorySpace.SMEM),   # [w/tau, b0/tau, b1/tau]
            pl.BlockSpec((TR, C), lambda i: (i, 0)),             # lane-dense x rows
        ],
        out_specs=pl.BlockSpec((O, TR, C), lambda i: (0, i, 0)), # lane-dense planes
        compiler_params=pltpu.CompilerParams(
            dimension_semantics=("parallel",),                   # shard rows on v7x TCs
        ),
    )(params, x2d)

    # Layout plumbing back to the module's (N, 2) output.
    out = out_planes.reshape(O, n_slab)[:, :N]
    return out.T


def _reference(x, betas, tau, output_features):
    """Pure-JAX replica of the torch forward (for verification)."""
    O = output_features
    w = jnp.arange(O - 1, dtype=jnp.float32).reshape(-1, O - 1)
    b = jnp.cumsum(
        jnp.concatenate([jnp.zeros((1,), jnp.float32), -jnp.sort(betas)])
    )
    logits = (x @ w + b) / tau
    return jax.nn.softmax(logits, axis=1)


if __name__ == "__main__":
    key = jax.random.PRNGKey(0)
    kx, kb, kx2 = jax.random.split(key, 3)

    input_features = 1     # required by torch.mm(x, w) with w of shape (1, O-1)
    output_features = 2    # required by the (N, O-1) + (O,) broadcast
    tau = 0.5

    betas = jax.random.uniform(kb, (output_features - 1,), dtype=jnp.float32)

    # Test 1: small batch, single block.
    x = jax.random.normal(kx, (256, input_features), dtype=jnp.float32)
    out = jax.block_until_ready(semilinear_temperatured(x, betas, tau, output_features))
    ref = jax.block_until_ready(_reference(x, betas, tau, output_features))
    np.testing.assert_allclose(np.asarray(out), np.asarray(ref), rtol=1e-5, atol=1e-6)

    # Constant-folded fast path (finite x) matches too.
    out_fold = jax.block_until_ready(
        semilinear_temperatured(x, betas, tau, output_features, assume_finite_x=True))
    np.testing.assert_allclose(np.asarray(out_fold), np.asarray(ref), rtol=1e-5, atol=1e-6)

    # Test 2: multi-block grid, ragged padding, and NaN-propagation parity.
    x2 = jax.random.normal(kx2, (2100, input_features), dtype=jnp.float32)
    x2 = x2.at[7, 0].set(jnp.nan)      # strict parity: NaN must propagate through x*0
    out2 = jax.block_until_ready(
        semilinear_temperatured(x2, betas, tau, output_features,
                                lane_cols=128, block_rows=8))
    ref2 = jax.block_until_ready(_reference(x2, betas, tau, output_features))
    np.testing.assert_allclose(np.asarray(out2), np.asarray(ref2), rtol=1e-5, atol=1e-6)

    print("KERNEL_OK")
</pallas_src>

<mosaic_0001>
module attributes {stable_mosaic.version = 11 : i64} {
  func.func @_semilinear_kernel(%arg0: i32, %arg1: memref<3xf32, #tpu.memory_space<smem>>, %arg2: memref<8x512xf32, #tpu.memory_space<vmem>>, %arg3: memref<2x8x512xf32, #tpu.memory_space<vmem>>) attributes {dimension_semantics = [#tpu.dimension_semantics<parallel>], iteration_bounds = array<i64: 1>, scalar_prefetch = 0 : i64, scratch_operands = 0 : i64, tpu.core_type = #tpu.core_type<tc>, window_params = [{transform_indices = @transform_0, window_bounds = array<i64: 3>}, {transform_indices = @transform_1, window_bounds = array<i64: 8, 512>}, {transform_indices = @transform_2, window_bounds = array<i64: 2, 8, 512>}]} {
    %c0 = arith.constant 0 : index
    %0 = memref.load %arg1[%c0] : memref<3xf32, #tpu.memory_space<smem>>
    %c1 = arith.constant 1 : index
    %1 = memref.load %arg1[%c1] : memref<3xf32, #tpu.memory_space<smem>>
    %c2 = arith.constant 2 : index
    %2 = memref.load %arg1[%c2] : memref<3xf32, #tpu.memory_space<smem>>
    %c0_0 = arith.constant 0 : index
    %c0_1 = arith.constant 0 : index
    %3 = vector.load %arg2[%c0_0, %c0_1] : memref<8x512xf32, #tpu.memory_space<vmem>>, vector<8x512xf32>
    %4 = vector.broadcast %0 : f32 to vector<8x512xf32>
    %5 = arith.mulf %3, %4 : vector<8x512xf32>
    %6 = vector.broadcast %1 : f32 to vector<8x512xf32>
    %7 = arith.addf %5, %6 : vector<8x512xf32>
    %8 = vector.broadcast %2 : f32 to vector<8x512xf32>
    %9 = arith.addf %5, %8 : vector<8x512xf32>
    %10 = arith.maximumf %7, %9 : vector<8x512xf32>
    %11 = arith.subf %7, %10 : vector<8x512xf32>
    %12 = math.exp %11 : vector<8x512xf32>
    %13 = arith.subf %9, %10 : vector<8x512xf32>
    %14 = math.exp %13 : vector<8x512xf32>
    %15 = arith.addf %12, %14 : vector<8x512xf32>
    %cst = arith.constant 1.000000e+00 : f32
    %16 = vector.broadcast %cst : f32 to vector<8x512xf32>
    %17 = arith.divf %16, %15 : vector<8x512xf32>
    %18 = arith.mulf %12, %17 : vector<8x512xf32>
    %c0_2 = arith.constant 0 : index
    %c0_3 = arith.constant 0 : index
    %c0_4 = arith.constant 0 : index
    %19 = vector.load %arg3[%c0_2, %c0_3, %c0_4] : memref<2x8x512xf32, #tpu.memory_space<vmem>>, vector<1x8x512xf32>
    %20 = vector.shape_cast %19 : vector<1x8x512xf32> to vector<8x512xf32>
    %21 = vector.shape_cast %18 : vector<8x512xf32> to vector<1x8x512xf32>
    tpu.vector_store %arg3[%c0_2, %c0_3, %c0_4], %21 {strides = array<i32>} : memref<2x8x512xf32, #tpu.memory_space<vmem>>, vector<1x8x512xf32>,
    %22 = arith.mulf %14, %17 : vector<8x512xf32>
    %c1_5 = arith.constant 1 : index
    %c0_6 = arith.constant 0 : index
    %c0_7 = arith.constant 0 : index
    %23 = vector.load %arg3[%c1_5, %c0_6, %c0_7] : memref<2x8x512xf32, #tpu.memory_space<vmem>>, vector<1x8x512xf32>
    %24 = vector.shape_cast %23 : vector<1x8x512xf32> to vector<8x512xf32>
    %25 = vector.shape_cast %22 : vector<8x512xf32> to vector<1x8x512xf32>
    tpu.vector_store %arg3[%c1_5, %c0_6, %c0_7], %25 {strides = array<i32>} : memref<2x8x512xf32, #tpu.memory_space<vmem>>, vector<1x8x512xf32>,
    return
  }
  func.func @transform_0(%arg0: i32) -> i32 {
    %c0_i32 = arith.constant 0 : i32
    %c0_i32_0 = arith.constant 0 : i32
    return %c0_i32 : i32
  }
  func.func @transform_1(%arg0: i32) -> (i32, i32) {
    %c0_i32 = arith.constant 0 : i32
    %c0_i32_0 = arith.constant 0 : i32
    return %arg0, %c0_i32 : i32, i32
  }
  func.func @transform_2(%arg0: i32) -> (i32, i32, i32) {
    %c0_i32 = arith.constant 0 : i32
    %c0_i32_0 = arith.constant 0 : i32
    %c0_i32_1 = arith.constant 0 : i32
    return %c0_i32, %arg0, %c0_i32_0 : i32, i32, i32
  }
}

</mosaic_0001>

<bundles_post_ra>
// kernel: tpu_custom_call.1
= control target key start
LH: loop header
LB: loop body
LE: loop exit
PB: predicated region body
PF: predicated region fallthrough
CT: control target
= control target key end

     0   :  { %7 = vsyncpa [#allocation5], 0  ;;  %s279_s0 = inlined_call_operand.hbm [shape: f32[3], index: 0, kind: input, shape index: {}]   ;;  %s280_s1 = inlined_call_operand.hbm [shape: f32[8,512], index: 1, kind: input, shape index: {}]   ;;  %s281_s2 = inlined_call_operand.hbm [shape: f32[2,8,512], index: 2, kind: output, shape index: {}]  }
   0x1   :  { %8 = vsyncpa [#allocation3], 0 }
   0x2   :  { %9 = vsyncpa [#allocation4], 0  ;;  %s163_s11 = scalar_lea.hbm %s279_s0, 16 }
   0x3   :  { %p164_p0 = scmp.ne.s32.totalorder %s279_s0, %s163_s11  ;;  %p167_p1 = scmp.lt.u32.totalorder %s163_s11, %s279_s0 }
   0x5   :  { %p169_p2 = pnand %p167_p1, %p164_p0 }
   0x7   :  { %172 = shalt.err (!%p169_p2)
}
   0x8   :  { %s223_s16 = smov [#allocation2]   ;;  %s224_s19 = smov [#allocation6]  }
   0x9   :  { %17 = dma.hbm_to_smem %s279_s0, 16, %s223_s16, [#allocation5]  }
   0xa   :  { %s24_s20 = sshll.u32 %s224_s19, 4  ;;  %s173_s23 = scalar_lea.hbm %s280_s1, 512  ;;  %s25_s20 = int_to_ptr.vmem [resolvable:$true] %s24_s20 }
   0xb   :  { %p174_p3 = scmp.ne.s32.totalorder %s280_s1, %s173_s23  ;;  %p177_p4 = scmp.lt.u32.totalorder %s173_s23, %s280_s1 }
   0xd   :  { %p179_p5 = pnand %p177_p4, %p174_p3 }
   0xf   :  { %182 = shalt.err (!%p179_p5)
}
  0x10   :  { %s183_s28 = scalar_lea.vmem %s25_s20, 512  ;;  %p188_p7 = scmp.lt.s32.totalorder %s25_s20, %s25_s20 }
  0x11   :  { %p184_p6 = scmp.ne.s32.totalorder %s25_s20, %s183_s28  ;;  %p189_p8 = scmp.lt.s32.totalorder %s183_s28, %s183_s28 }
  0x13   :  { %p190_p9 = por %p189_p8, %p188_p7 }
  0x15   :  { %p191_p10 = pnand %p190_p9, %p184_p6 }
  0x17   :  { %194 = shalt.err (!%p191_p10)
}
  0x18   :  { %27 = dma.hbm_to_vmem [thread:$0]  %s280_s1, 512, %s25_s20, [#allocation3]  }
  0x19   :  { %217 = dma.done.wait [#allocation5], 16  }
  0x1a   :  { %218 = vsyncadd [#allocation5], 4294967280 }
  0x1b   :  { %219 = dma.done.wait [#allocation3], 512  }
  0x1c   :  { %220 = vsyncadd [#allocation3], 4294966784 }
  0x1d   :  { %34 = sfence }
  0x1e   :  { %s35_s30 = sld [smem:[#allocation2]]  ;;  %s132_s3 = sld [smem:[#allocation2 + $0x1]]  ;;  %v38_v0 = vld [vmem:[#allocation6] sm:$0xff]  ;;  %v39_v1 = vld [vmem:[#allocation6 + $0x8] sm:$0xff]  ;;  %v40_v2 = vld [vmem:[#allocation6 + $0x10] sm:$0xff] }
  0x1f   :  { %s133_s4 = sld [smem:[#allocation2 + $0x2]]  ;;  %v41_v3 = vld [vmem:[#allocation6 + $0x18] sm:$0xff]  ;;  %s225_s1 = smov [#allocation7]  }
  0x20   :  { %s119_s5 = sshll.u32 %s225_s1, 4  ;;  %s120_s5 = int_to_ptr.vmem [resolvable:$true] %s119_s5 }
  0x21   :  { %s195_s6 = scalar_lea.vmem %s120_s5, 1024  ;;  %p200_p12 = scmp.lt.s32.totalorder %s120_s5, %s120_s5 }
  0x22   :  { %p196_p11 = scmp.ne.s32.totalorder %s120_s5, %s195_s6  ;;  %p201_p13 = scmp.lt.s32.totalorder %s195_s6, %s195_s6 }
  0x24   :  { %v42_v4 = vstv %s35_s30  ;;  %v47_v5 = vstv %s132_s3  ;;  %p202_p0 = por %p201_p13, %p200_p12 }
  0x25   :  { %v43_v6 = vmul.f32 %v42_v4, %v38_v0  ;;  %v52_v7 = vstv %s133_s4  ;;  %v44_v8 = vmul.f32 %v42_v4, %v39_v1  ;;  %v45_v9 = vmul.f32 %v42_v4, %v40_v2 }
  0x26   :  { %v46_v10 = vmul.f32 %v42_v4, %v41_v3  ;;  %p203_p1 = pnand %p202_p0, %p196_p11 }
  0x27   :  { %v48_v11 = vadd.f32 %v47_v5, %v43_v6  ;;  %v53_v12 = vadd.f32 %v52_v7, %v43_v6  ;;  %v49_v13 = vadd.f32 %v47_v5, %v44_v8  ;;  %v54_v14 = vadd.f32 %v52_v7, %v44_v8 }
  0x28   :  { %v50_v15 = vadd.f32 %v47_v5, %v45_v9  ;;  %v55_v16 = vadd.f32 %v52_v7, %v45_v9  ;;  %v51_v17 = vadd.f32 %v47_v5, %v46_v10  ;;  %v56_v18 = vadd.f32 %v52_v7, %v46_v10 }
  0x29   :  { %v57_v19 = vmax.f32 %v48_v11, %v53_v12  ;;  %v58_v20 = vmax.f32 %v49_v13, %v54_v14 }
  0x2a   :  { %v59_v21 = vmax.f32 %v50_v15, %v55_v16  ;;  %v60_v22 = vmax.f32 %v51_v17, %v56_v18 }
  0x2b   :  { %v61_v23 = vsub.f32 %v48_v11, %v57_v19  ;;  %v73_v24 = vsub.f32 %v53_v12, %v57_v19  ;;  %v62_v25 = vsub.f32 %v49_v13, %v58_v20  ;;  %v74_v26 = vsub.f32 %v54_v14, %v58_v20 }
  0x2c   :  { %v63_v27 = vsub.f32 %v50_v15, %v59_v21  ;;  %v75_v28 = vsub.f32 %v55_v16, %v59_v21  ;;  %v64_v32 = vsub.f32 %v51_v17, %v60_v22  ;;  %v76_v34 = vsub.f32 %v56_v18, %v60_v22 }
  0x2d   :  { %v65_v29 = vmul.f32 1.442695, %v61_v23  ;;  %v77_v30 = vmul.f32 1.442695, %v73_v24  ;;  %v67_v31 = vmul.f32 1.442695, %v62_v25 }
  0x2e   :  { %v79_v33 = vmul.f32 1.442695, %v74_v26  ;;  %v69_v35 = vmul.f32 1.442695, %v63_v27  ;;  %v81_v36 = vmul.f32 1.442695, %v75_v28 }
  0x2f   :  { %139 = vpow2.f32 %v65_v29  ;;  %v71_v37 = vmul.f32 1.442695, %v64_v32  ;;  %v83_v38 = vmul.f32 1.442695, %v76_v34 }
  0x30   :  { %141 = vpow2.f32 %v77_v30 }
  0x31   :  { %143 = vpow2.f32 %v67_v31 }
  0x32   :  { %145 = vpow2.f32 %v79_v33 }
  0x33   :  { %147 = vpow2.f32 %v69_v35 }
  0x34   :  { %149 = vpow2.f32 %v81_v36 }
  0x35   :  { %151 = vpow2.f32 %v71_v37 }
  0x36   :  { %153 = vpow2.f32 %v83_v38 }
  0x39   :  { %v140_v39 = vpop.eup %139 }
  0x3a   :  { %v142_v40 = vpop.eup %141 }
  0x3b   :  { %v144_v41 = vpop.eup %143  ;;  %v85_v42 = vadd.f32 %v142_v40, %v140_v39 }
  0x3c   :  { %v146_v43 = vpop.eup %145 }
  0x3d   :  { %v148_v44 = vpop.eup %147  ;;  %155 = vrcp.f32 %v85_v42  ;;  %v86_v45 = vadd.f32 %v146_v43, %v144_v41 }
  0x3e   :  { %v150_v46 = vpop.eup %149 }
  0x3f   :  { %v152_v47 = vpop.eup %151  ;;  %157 = vrcp.f32 %v86_v45  ;;  %v87_v48 = vadd.f32 %v150_v46, %v148_v44 }
  0x40   :  { %v154_v49 = vpop.eup %153 }
  0x41   :  { %159 = vrcp.f32 %v87_v48  ;;  %v88_v50 = vadd.f32 %v154_v49, %v152_v47 }
  0x43   :  { %161 = vrcp.f32 %v88_v50 }
  0x47   :  { %v156_v51 = vpop.eup %155 }
  0x48   :  { %v97_v52 = vmul.f32 %v156_v51, %v140_v39  ;;  %v105_v53 = vmul.f32 %v156_v51, %v142_v40 }
  0x49   :  { %v158_v54 = vpop.eup %157 }
  0x4a   :  { %101 = vst [vmem:[#allocation7] sm:$0xff] %v97_v52  ;;  %v98_v55 = vmul.f32 %v158_v54, %v144_v41  ;;  %110 = vst [vmem:[#allocation7 + $0x20] sm:$0xff] %v105_v53  ;;  %v106_v56 = vmul.f32 %v158_v54, %v146_v43 }
  0x4b   :  { %v160_v57 = vpop.eup %159 }
  0x4c   :  { %102 = vst [vmem:[#allocation7 + $0x8] sm:$0xff] %v98_v55  ;;  %v99_v58 = vmul.f32 %v160_v57, %v148_v44  ;;  %111 = vst [vmem:[#allocation7 + $0x28] sm:$0xff] %v106_v56  ;;  %v107_v59 = vmul.f32 %v160_v57, %v150_v46 }
  0x4d   :  { %v162_v60 = vpop.eup %161 }
  0x4e   :  { %103 = vst [vmem:[#allocation7 + $0x10] sm:$0xff] %v99_v58  ;;  %v100_v61 = vmul.f32 %v162_v60, %v152_v47  ;;  %112 = vst [vmem:[#allocation7 + $0x30] sm:$0xff] %v107_v59  ;;  %v108_v62 = vmul.f32 %v162_v60, %v154_v49 }
  0x50   :  { %104 = vst [vmem:[#allocation7 + $0x18] sm:$0xff] %v100_v61  ;;  %113 = vst [vmem:[#allocation7 + $0x38] sm:$0xff] %v108_v62 }
  0x51   :  { %206 = shalt.err (!%p203_p1)
}
  0x52   :  { %s207_s9 = scalar_lea.hbm %s281_s2, 1024 }
  0x53   :  { %p208_p2 = scmp.ne.s32.totalorder %s281_s2, %s207_s9  ;;  %p211_p3 = scmp.lt.u32.totalorder %s207_s9, %s281_s2 }
  0x55   :  { %p213_p4 = pnand %p211_p3, %p208_p2 }
  0x57   :  { %216 = shalt.err (!%p213_p4)
}
  0x58   :  { %s226_s14 = smov 512   ;;  %s227_s15 = smov 32  }
  0x59   :  { %125 = dma.vmem_to_hbm [thread:$0]  %s120_s5, 1024, %s281_s2, [#allocation4], %s226_s14, %s226_s14, %s227_s15  }
  0x5a   :  { %221 = dma.done.wait [#allocation4], 1024  }
  0x5b   :  { %222 = vsyncadd [#allocation4], 4294966272 }
  0x5c   :  { %129 = vsyncpa [#allocation3], 1 }
  0x5d   :  { %130 = vsyncpa [#allocation4], 1 }
  0x5e   :  { %131 = vsyncpa [#allocation5], 1 }

</bundles_post_ra>
